<compile_context>
chip_gen: v7x
topology: tpu7x:2x2x1
jax: 0.10.0
libtpu: 0.0.40
codegen_flags: <defaults>
</compile_context>

<pallas_src>
import functools

import jax
import jax.numpy as jnp
import numpy as np
from jax.experimental import pallas as pl
from jax.experimental.pallas import tpu as pltpu


def _round_up(x, m):
    return (x + m - 1) // m * m


def _pad_to(a, shape, dtype):
    """Cast to dtype and zero-pad up to `shape`; no copy if already matching."""
    a = a.astype(dtype)
    if tuple(a.shape) == tuple(shape):
        return a
    idx = tuple(slice(0, d) for d in a.shape)
    return jnp.zeros(shape, dtype).at[idx].set(a)


def _lif_seq_kernel(is_recurrent, has_state, t_chunk, ab_ref, x_ref, w_ref,
                    *rest):
    """Fused LIF scan. Grid = (batch_tiles, T // Tc); time is the inner axis."""
    rest = list(rest)
    wr_ref = rest.pop(0) if is_recurrent else None
    if has_state:
        syn0_ref = rest.pop(0)
        mem0_ref = rest.pop(0)
        s0_ref = rest.pop(0) if is_recurrent else None
    spk_ref = rest.pop(0)
    syn_ref = rest.pop(0)
    mem_ref = rest.pop(0)
    s_prev_ref = rest.pop(0) if is_recurrent else None

    # Initialize the VMEM-resident carried state once per batch tile.
    @pl.when(pl.program_id(1) == 0)
    def _init():
        if has_state:
            syn_ref[...] = syn0_ref[...]
            mem_ref[...] = mem0_ref[...]
            if is_recurrent:
                s_prev_ref[...] = s0_ref[...]
        else:
            syn_ref[...] = jnp.zeros_like(syn_ref)
            mem_ref[...] = jnp.zeros_like(mem_ref)
            if is_recurrent:
                s_prev_ref[...] = jnp.zeros_like(s_prev_ref)

    alpha = ab_ref[0]
    beta = ab_ref[1]

    # Batched input projection for the whole time block: x@W has no sequential
    # dependence, so feed the MXU one (Tc*TB, K) LHS instead of Tc small ones.
    w = w_ref[...]
    x = x_ref[...]                                   # (Tc, TB, K)
    tb = x.shape[1]
    h_all = jnp.dot(x.reshape(t_chunk * tb, x.shape[2]).astype(w.dtype), w,
                    preferred_element_type=jnp.float32)   # (Tc*TB, Np)

    syn = syn_ref[...]
    mem = mem_ref[...]
    if is_recurrent:
        wr = wr_ref[...]
        s = s_prev_ref[...]

    # Short unrolled recurrence over the Tc steps; state stays in registers,
    # only the per-step spike slice is stored.
    for i in range(t_chunk):
        h1 = h_all[i * tb:(i + 1) * tb]
        if is_recurrent:
            h1 = h1 + jnp.dot(s.astype(wr.dtype), wr,
                              preferred_element_type=jnp.float32)
        syn = alpha * syn + h1
        mem = beta * mem + syn
        spiked = mem >= 1.0                          # == (mem - 1 >= 0)
        spike = spiked.astype(jnp.float32)
        spk_ref[i] = spike.astype(spk_ref.dtype)
        mem = jnp.where(spiked, 0.0, mem)            # == mem * (1 - spike)
        if is_recurrent:
            s = spike

    syn_ref[...] = syn
    mem_ref[...] = mem
    if is_recurrent:
        s_prev_ref[...] = s


def lif_forward_seq(x_seq, weight, weight_rec, state, alpha, beta,
                    is_recurrent=True, compute_dtype=jnp.float32,
                    spike_dtype=jnp.float32):
    """Run T LIF_neuron.forward steps fused in one pallas_call.

    x_seq: (T, batch, nb_inputs).  Returns (spikes (T, batch, nb_outputs),
    (syn, mem, S) final state), identical to T sequential module calls.
    """
    f32 = jnp.float32
    T, B, K = x_seq.shape
    N = weight.shape[1]
    has_state = state is not None

    # --- tiling --------------------------------------------------------------
    Bp = _round_up(B, 8)                 # sublane alignment
    TB = min(Bp, 128)                    # batch tile
    # v7x megacore: prefer >= 2 parallel batch tiles when the batch allows it.
    if Bp // TB < 2 and Bp >= 16 and (Bp // 2) % 8 == 0:
        TB = Bp // 2
    Bp = _round_up(Bp, TB)
    Np = _round_up(N, 128)               # lane-dense outputs / weight columns
    # Time block: largest divisor of T <= 8 (padded time steps would corrupt
    # the recurrent state, so only exact divisors are used).
    Tc = 1
    for c in range(min(T, 8), 0, -1):
        if T % c == 0:
            Tc = c
            break
    n_b, n_t = Bp // TB, T // Tc

    # --- operands: only pad what must be padded (skip copies when aligned) ---
    x_p = _pad_to(x_seq, (T, Bp, K), f32)            # K stays unpadded
    w_p = _pad_to(weight, (K, Np), compute_dtype)
    ab = jnp.array([alpha, beta], f32)

    args = [ab, x_p, w_p]
    in_specs = [
        pl.BlockSpec(memory_space=pltpu.MemorySpace.SMEM),        # alpha/beta
        pl.BlockSpec((Tc, TB, K), lambda b, t: (t, b, 0)),        # x time block
        pl.BlockSpec((K, Np), lambda b, t: (0, 0),                # W: resident,
                     pipeline_mode=pl.Buffered(1)),               # single buffer
    ]
    if is_recurrent:
        wr_p = _pad_to(weight_rec, (Np, Np), compute_dtype)
        args.append(wr_p)
        in_specs.append(pl.BlockSpec((Np, Np), lambda b, t: (0, 0),
                                     pipeline_mode=pl.Buffered(1)))
    if has_state:
        syn_in, mem_in, s_in = state
        state_in_spec = pl.BlockSpec((TB, Np), lambda b, t: (b, 0),
                                     pipeline_mode=pl.Buffered(1))
        args += [_pad_to(syn_in, (Bp, Np), f32),
                 _pad_to(mem_in, (Bp, Np), f32)]
        in_specs += [state_in_spec, state_in_spec]
        if is_recurrent:
            args.append(_pad_to(s_in, (Bp, Np), f32))
            in_specs.append(state_in_spec)

    state_out_spec = pl.BlockSpec((TB, Np), lambda b, t: (b, 0))
    out_shape = (
        jax.ShapeDtypeStruct((T, Bp, Np), spike_dtype),   # spikes per step
        jax.ShapeDtypeStruct((Bp, Np), f32),              # final syn
        jax.ShapeDtypeStruct((Bp, Np), f32),              # final mem (reset)
    )
    out_specs = (
        pl.BlockSpec((Tc, TB, Np), lambda b, t: (t, b, 0)),
        state_out_spec,
        state_out_spec,
    )

    scratch_shapes = []
    if is_recurrent:
        scratch_shapes.append(pltpu.VMEM((TB, Np), f32))  # carried spikes S

    # VMEM budget for the actual resident set, with headroom.  Default scoped
    # limits are 16 MiB (v5e) / 32 MiB (v6e, v7x); v7x physical VMEM is 64 MiB.
    wb = jnp.dtype(compute_dtype).itemsize
    sb = jnp.dtype(spike_dtype).itemsize
    need = (2 * Tc * TB * K * 4          # x, double-buffered
            + K * Np * wb                # W, single-buffered
            + 2 * Tc * TB * Np * sb      # spike blocks, double-buffered
            + 2 * 2 * TB * Np * 4)       # syn/mem output blocks
    if is_recurrent:
        need += Np * Np * wb + TB * Np * 4
    if has_state:
        need += (3 if is_recurrent else 2) * TB * Np * 4
    vmem_limit = min(max(2 * need + (4 << 20), 32 << 20), 64 << 20)

    kernel = functools.partial(_lif_seq_kernel, bool(is_recurrent),
                               bool(has_state), Tc)

    spikes_p, syn_p, mem_p = pl.pallas_call(
        kernel,
        grid=(n_b, n_t),
        out_shape=out_shape,
        in_specs=in_specs,
        out_specs=out_specs,
        scratch_shapes=scratch_shapes,
        compiler_params=pltpu.CompilerParams(
            dimension_semantics=("parallel", "arbitrary"),
            vmem_limit_bytes=vmem_limit),
    )(*args)

    spikes = spikes_p[:, :B, :N]
    new_state = (syn_p[:B, :N], mem_p[:B, :N], spikes[-1].astype(f32))
    return spikes, new_state


def lif_step_reference(x, weight, weight_rec, state, alpha, beta,
                       is_recurrent=True):
    """Pure-JAX single-step reference mirroring the PyTorch module."""
    h1 = jnp.dot(x, weight, precision=jax.lax.Precision.HIGHEST)
    B, N = h1.shape
    if state is None:
        z = jnp.zeros((B, N), jnp.float32)
        state = (z, z, z)
    syn, mem, S = state
    if is_recurrent:
        h1 = h1 + jnp.dot(S, weight_rec, precision=jax.lax.Precision.HIGHEST)
    new_syn = alpha * syn + h1
    new_mem = beta * mem + new_syn
    out = (new_mem - 1.0 >= 0.0).astype(jnp.float32)
    return out, (new_syn, new_mem * (1.0 - out), out)


if __name__ == "__main__":
    batch = 2
    nb_inputs = 16
    nb_outputs = 32
    T = 8
    alpha = 0.9
    beta = 0.8
    fwd_weight_scale = 1.0
    rec_weight_scale = 1.0

    key = jax.random.PRNGKey(0)
    kx, kw, kr = jax.random.split(key, 3)

    weight = (fwd_weight_scale / np.sqrt(nb_inputs)) * jax.random.normal(
        kw, (nb_inputs, nb_outputs), jnp.float32)
    weight_rec = (rec_weight_scale / np.sqrt(nb_inputs)) * jax.random.normal(
        kr, (nb_outputs, nb_outputs), jnp.float32)
    x_seq = jax.random.normal(kx, (T, batch, nb_inputs), jnp.float32)

    ref_cache = {}
    for recurrent in (True, False):
        spikes, state = lif_forward_seq(
            x_seq, weight, weight_rec if recurrent else None, None,
            alpha, beta, is_recurrent=recurrent)
        spikes = jax.block_until_ready(spikes)
        state = jax.tree_util.tree_map(jax.block_until_ready, state)

        # Reference: T sequential single-step calls (like the PyTorch module).
        ref_state = None
        ref_spikes = []
        for t in range(T):
            o, ref_state = lif_step_reference(
                x_seq[t], weight, weight_rec, ref_state, alpha, beta,
                is_recurrent=recurrent)
            ref_spikes.append(o)
        ref_spikes = jnp.stack(ref_spikes)
        ref_cache[recurrent] = ref_spikes

        np.testing.assert_allclose(np.asarray(spikes), np.asarray(ref_spikes),
                                   rtol=1e-5, atol=1e-5)
        for got, want in zip(state, ref_state):
            np.testing.assert_allclose(np.asarray(got), np.asarray(want),
                                       rtol=1e-5, atol=1e-5)

    # Exercise the explicit-initial-state path (recurrent): chain two kernel
    # calls over the split sequence and check against the full-run reference.
    spikes_a, st = lif_forward_seq(x_seq[:T // 2], weight, weight_rec, None,
                                   alpha, beta, is_recurrent=True)
    spikes_b, _ = lif_forward_seq(x_seq[T // 2:], weight, weight_rec, st,
                                  alpha, beta, is_recurrent=True)
    chained = jax.block_until_ready(
        jnp.concatenate([spikes_a, spikes_b], axis=0))
    np.testing.assert_allclose(np.asarray(chained),
                               np.asarray(ref_cache[True]),
                               rtol=1e-5, atol=1e-5)

    print("KERNEL_OK")
</pallas_src>

<mosaic_0001>
module attributes {stable_mosaic.version = 11 : i64} {
  func.func @_lif_seq_kernel(%arg0: i32, %arg1: i32, %arg2: memref<2xf32, #tpu.memory_space<smem>>, %arg3: memref<8x8x16xf32, #tpu.memory_space<vmem>>, %arg4: memref<16x128xf32, #tpu.memory_space<vmem>>, %arg5: memref<128x128xf32, #tpu.memory_space<vmem>>, %arg6: memref<8x8x128xf32, #tpu.memory_space<vmem>>, %arg7: memref<8x128xf32, #tpu.memory_space<vmem>>, %arg8: memref<8x128xf32, #tpu.memory_space<vmem>>, %arg9: memref<8x128xf32, #tpu.memory_space<vmem>>) attributes {dimension_semantics = [#tpu.dimension_semantics<parallel>, #tpu.dimension_semantics<arbitrary>], iteration_bounds = array<i64: 1, 1>, scalar_prefetch = 0 : i64, scratch_operands = 1 : i64, tpu.core_type = #tpu.core_type<tc>, window_params = [{transform_indices = @transform_0, window_bounds = array<i64: 2>}, {transform_indices = @transform_1, window_bounds = array<i64: 8, 8, 16>}, {pipeline_mode = #tpu.pipeline_mode<synchronous>, transform_indices = @transform_2, window_bounds = array<i64: 16, 128>}, {pipeline_mode = #tpu.pipeline_mode<synchronous>, transform_indices = @transform_3, window_bounds = array<i64: 128, 128>}, {transform_indices = @transform_4, window_bounds = array<i64: 8, 8, 128>}, {transform_indices = @transform_5, window_bounds = array<i64: 8, 128>}, {transform_indices = @transform_6, window_bounds = array<i64: 8, 128>}]} {
    %c0_i32 = arith.constant 0 : i32
    %0 = arith.cmpi eq, %arg1, %c0_i32 : i32
    %1 = arith.extui %0 : i1 to i32
    %c0_i32_0 = arith.constant 0 : i32
    %2 = arith.cmpi ne, %1, %c0_i32_0 : i32
    scf.if %2 {
      %cst_62 = arith.constant 0.000000e+00 : f32
      %160 = vector.broadcast %cst_62 : f32 to vector<8x128xf32>
      %c0_63 = arith.constant 0 : index
      %c0_64 = arith.constant 0 : index
      %161 = vector.load %arg7[%c0_63, %c0_64] : memref<8x128xf32, #tpu.memory_space<vmem>>, vector<8x128xf32>
      tpu.vector_store %arg7[%c0_63, %c0_64], %160 {strides = array<i32>} : memref<8x128xf32, #tpu.memory_space<vmem>>, vector<8x128xf32>,
      %cst_65 = arith.constant 0.000000e+00 : f32
      %162 = vector.broadcast %cst_65 : f32 to vector<8x128xf32>
      %c0_66 = arith.constant 0 : index
      %c0_67 = arith.constant 0 : index
      %163 = vector.load %arg8[%c0_66, %c0_67] : memref<8x128xf32, #tpu.memory_space<vmem>>, vector<8x128xf32>
      tpu.vector_store %arg8[%c0_66, %c0_67], %162 {strides = array<i32>} : memref<8x128xf32, #tpu.memory_space<vmem>>, vector<8x128xf32>,
      %cst_68 = arith.constant 0.000000e+00 : f32
      %164 = vector.broadcast %cst_68 : f32 to vector<8x128xf32>
      %c0_69 = arith.constant 0 : index
      %c0_70 = arith.constant 0 : index
      %165 = vector.load %arg9[%c0_69, %c0_70] : memref<8x128xf32, #tpu.memory_space<vmem>>, vector<8x128xf32>
      tpu.vector_store %arg9[%c0_69, %c0_70], %164 {strides = array<i32>} : memref<8x128xf32, #tpu.memory_space<vmem>>, vector<8x128xf32>,
    } else {
    }
    %c0 = arith.constant 0 : index
    %3 = memref.load %arg2[%c0] : memref<2xf32, #tpu.memory_space<smem>>
    %c1 = arith.constant 1 : index
    %4 = memref.load %arg2[%c1] : memref<2xf32, #tpu.memory_space<smem>>
    %c0_1 = arith.constant 0 : index
    %c0_2 = arith.constant 0 : index
    %5 = vector.load %arg4[%c0_1, %c0_2] : memref<16x128xf32, #tpu.memory_space<vmem>>, vector<16x128xf32>
    %c0_3 = arith.constant 0 : index
    %c0_4 = arith.constant 0 : index
    %c0_5 = arith.constant 0 : index
    %6 = vector.load %arg3[%c0_3, %c0_4, %c0_5] : memref<8x8x16xf32, #tpu.memory_space<vmem>>, vector<8x8x16xf32>
    %7 = vector.shape_cast %6 : vector<8x8x16xf32> to vector<64x16xf32>
    %cst = arith.constant dense<0.000000e+00> : vector<64x128xf32>
    %8 = tpu.matmul %7, %5, %cst {dimension_numbers = #tpu.dot_dimension_numbers<[1], [0], [0], [1], [0, 0, 1, 1], [], []>} : vector<64x16xf32>, vector<16x128xf32>, vector<64x128xf32> -> vector<64x128xf32>
    %c0_6 = arith.constant 0 : index
    %c0_7 = arith.constant 0 : index
    %9 = vector.load %arg7[%c0_6, %c0_7] : memref<8x128xf32, #tpu.memory_space<vmem>>, vector<8x128xf32>
    %c0_8 = arith.constant 0 : index
    %c0_9 = arith.constant 0 : index
    %10 = vector.load %arg8[%c0_8, %c0_9] : memref<8x128xf32, #tpu.memory_space<vmem>>, vector<8x128xf32>
    %c0_10 = arith.constant 0 : index
    %c0_11 = arith.constant 0 : index
    %11 = vector.load %arg5[%c0_10, %c0_11] : memref<128x128xf32, #tpu.memory_space<vmem>>, vector<128x128xf32>
    %c0_12 = arith.constant 0 : index
    %c0_13 = arith.constant 0 : index
    %12 = vector.load %arg9[%c0_12, %c0_13] : memref<8x128xf32, #tpu.memory_space<vmem>>, vector<8x128xf32>
    %13 = vector.extract_strided_slice %8 {offsets = [0, 0], sizes = [8, 128], strides = [1, 1]} : vector<64x128xf32> to vector<8x128xf32>
    %cst_14 = arith.constant dense<0.000000e+00> : vector<8x128xf32>
    %14 = tpu.matmul %12, %11, %cst_14 {dimension_numbers = #tpu.dot_dimension_numbers<[1], [0], [0], [1], [0, 0, 1, 1], [], []>} : vector<8x128xf32>, vector<128x128xf32>, vector<8x128xf32> -> vector<8x128xf32>
    %15 = arith.addf %13, %14 : vector<8x128xf32>
    %16 = vector.broadcast %3 : f32 to vector<8x128xf32>
    %17 = arith.mulf %16, %9 : vector<8x128xf32>
    %18 = arith.addf %17, %15 : vector<8x128xf32>
    %19 = vector.broadcast %4 : f32 to vector<8x128xf32>
    %20 = arith.mulf %19, %10 : vector<8x128xf32>
    %21 = arith.addf %20, %18 : vector<8x128xf32>
    %cst_15 = arith.constant 1.000000e+00 : f32
    %22 = vector.broadcast %cst_15 : f32 to vector<8x128xf32>
    %23 = arith.cmpf oge, %21, %22 : vector<8x128xf32>
    %24 = arith.extui %23 : vector<8x128xi1> to vector<8x128xi32>
    %25 = arith.sitofp %24 : vector<8x128xi32> to vector<8x128xf32>
    %c0_16 = arith.constant 0 : index
    %c0_17 = arith.constant 0 : index
    %c0_18 = arith.constant 0 : index
    %26 = vector.load %arg6[%c0_16, %c0_17, %c0_18] : memref<8x8x128xf32, #tpu.memory_space<vmem>>, vector<1x8x128xf32>
    %27 = vector.shape_cast %26 : vector<1x8x128xf32> to vector<8x128xf32>
    %28 = vector.shape_cast %25 : vector<8x128xf32> to vector<1x8x128xf32>
    tpu.vector_store %arg6[%c0_16, %c0_17, %c0_18], %28 {strides = array<i32>} : memref<8x8x128xf32, #tpu.memory_space<vmem>>, vector<1x8x128xf32>,
    %cst_19 = arith.constant 0.000000e+00 : f32
    %29 = vector.broadcast %cst_19 : f32 to vector<8x128xf32>
    %30 = arith.select %23, %29, %21 : vector<8x128xi1>, vector<8x128xf32>
    %31 = vector.extract_strided_slice %8 {offsets = [8, 0], sizes = [8, 128], strides = [1, 1]} : vector<64x128xf32> to vector<8x128xf32>
    %cst_20 = arith.constant dense<0.000000e+00> : vector<8x128xf32>
    %32 = tpu.matmul %25, %11, %cst_20 {dimension_numbers = #tpu.dot_dimension_numbers<[1], [0], [0], [1], [0, 0, 1, 1], [], []>} : vector<8x128xf32>, vector<128x128xf32>, vector<8x128xf32> -> vector<8x128xf32>
    %33 = arith.addf %31, %32 : vector<8x128xf32>
    %34 = vector.broadcast %3 : f32 to vector<8x128xf32>
    %35 = arith.mulf %34, %18 : vector<8x128xf32>
    %36 = arith.addf %35, %33 : vector<8x128xf32>
    %37 = vector.broadcast %4 : f32 to vector<8x128xf32>
    %38 = arith.mulf %37, %30 : vector<8x128xf32>
    %39 = arith.addf %38, %36 : vector<8x128xf32>
    %cst_21 = arith.constant 1.000000e+00 : f32
    %40 = vector.broadcast %cst_21 : f32 to vector<8x128xf32>
    %41 = arith.cmpf oge, %39, %40 : vector<8x128xf32>
    %42 = arith.extui %41 : vector<8x128xi1> to vector<8x128xi32>
    %43 = arith.sitofp %42 : vector<8x128xi32> to vector<8x128xf32>
    %c1_22 = arith.constant 1 : index
    %c0_23 = arith.constant 0 : index
    %c0_24 = arith.constant 0 : index
    %44 = vector.load %arg6[%c1_22, %c0_23, %c0_24] : memref<8x8x128xf32, #tpu.memory_space<vmem>>, vector<1x8x128xf32>
    %45 = vector.shape_cast %44 : vector<1x8x128xf32> to vector<8x128xf32>
    %46 = vector.shape_cast %43 : vector<8x128xf32> to vector<1x8x128xf32>
    tpu.vector_store %arg6[%c1_22, %c0_23, %c0_24], %46 {strides = array<i32>} : memref<8x8x128xf32, #tpu.memory_space<vmem>>, vector<1x8x128xf32>,
    %cst_25 = arith.constant 0.000000e+00 : f32
    %47 = vector.broadcast %cst_25 : f32 to vector<8x128xf32>
    %48 = arith.select %41, %47, %39 : vector<8x128xi1>, vector<8x128xf32>
    %49 = vector.extract_strided_slice %8 {offsets = [16, 0], sizes = [8, 128], strides = [1, 1]} : vector<64x128xf32> to vector<8x128xf32>
    %cst_26 = arith.constant dense<0.000000e+00> : vector<8x128xf32>
    %50 = tpu.matmul %43, %11, %cst_26 {dimension_numbers = #tpu.dot_dimension_numbers<[1], [0], [0], [1], [0, 0, 1, 1], [], []>} : vector<8x128xf32>, vector<128x128xf32>, vector<8x128xf32> -> vector<8x128xf32>
    %51 = arith.addf %49, %50 : vector<8x128xf32>
    %52 = vector.broadcast %3 : f32 to vector<8x128xf32>
    %53 = arith.mulf %52, %36 : vector<8x128xf32>
    %54 = arith.addf %53, %51 : vector<8x128xf32>
    %55 = vector.broadcast %4 : f32 to vector<8x128xf32>
    %56 = arith.mulf %55, %48 : vector<8x128xf32>
    %57 = arith.addf %56, %54 : vector<8x128xf32>
    %cst_27 = arith.constant 1.000000e+00 : f32
    %58 = vector.broadcast %cst_27 : f32 to vector<8x128xf32>
    %59 = arith.cmpf oge, %57, %58 : vector<8x128xf32>
    %60 = arith.extui %59 : vector<8x128xi1> to vector<8x128xi32>
    %61 = arith.sitofp %60 : vector<8x128xi32> to vector<8x128xf32>
    %c2 = arith.constant 2 : index
    %c0_28 = arith.constant 0 : index
    %c0_29 = arith.constant 0 : index
    %62 = vector.load %arg6[%c2, %c0_28, %c0_29] : memref<8x8x128xf32, #tpu.memory_space<vmem>>, vector<1x8x128xf32>
    %63 = vector.shape_cast %62 : vector<1x8x128xf32> to vector<8x128xf32>
    %64 = vector.shape_cast %61 : vector<8x128xf32> to vector<1x8x128xf32>
    tpu.vector_store %arg6[%c2, %c0_28, %c0_29], %64 {strides = array<i32>} : memref<8x8x128xf32, #tpu.memory_space<vmem>>, vector<1x8x128xf32>,
    %cst_30 = arith.constant 0.000000e+00 : f32
    %65 = vector.broadcast %cst_30 : f32 to vector<8x128xf32>
    %66 = arith.select %59, %65, %57 : vector<8x128xi1>, vector<8x128xf32>
    %67 = vector.extract_strided_slice %8 {offsets = [24, 0], sizes = [8, 128], strides = [1, 1]} : vector<64x128xf32> to vector<8x128xf32>
    %cst_31 = arith.constant dense<0.000000e+00> : vector<8x128xf32>
    %68 = tpu.matmul %61, %11, %cst_31 {dimension_numbers = #tpu.dot_dimension_numbers<[1], [0], [0], [1], [0, 0, 1, 1], [], []>} : vector<8x128xf32>, vector<128x128xf32>, vector<8x128xf32> -> vector<8x128xf32>
    %69 = arith.addf %67, %68 : vector<8x128xf32>
    %70 = vector.broadcast %3 : f32 to vector<8x128xf32>
    %71 = arith.mulf %70, %54 : vector<8x128xf32>
    %72 = arith.addf %71, %69 : vector<8x128xf32>
    %73 = vector.broadcast %4 : f32 to vector<8x128xf32>
    %74 = arith.mulf %73, %66 : vector<8x128xf32>
    %75 = arith.addf %74, %72 : vector<8x128xf32>
    %cst_32 = arith.constant 1.000000e+00 : f32
    %76 = vector.broadcast %cst_32 : f32 to vector<8x128xf32>
    %77 = arith.cmpf oge, %75, %76 : vector<8x128xf32>
    %78 = arith.extui %77 : vector<8x128xi1> to vector<8x128xi32>
    %79 = arith.sitofp %78 : vector<8x128xi32> to vector<8x128xf32>
    %c3 = arith.constant 3 : index
    %c0_33 = arith.constant 0 : index
    %c0_34 = arith.constant 0 : index
    %80 = vector.load %arg6[%c3, %c0_33, %c0_34] : memref<8x8x128xf32, #tpu.memory_space<vmem>>, vector<1x8x128xf32>
    %81 = vector.shape_cast %80 : vector<1x8x128xf32> to vector<8x128xf32>
    %82 = vector.shape_cast %79 : vector<8x128xf32> to vector<1x8x128xf32>
    tpu.vector_store %arg6[%c3, %c0_33, %c0_34], %82 {strides = array<i32>} : memref<8x8x128xf32, #tpu.memory_space<vmem>>, vector<1x8x128xf32>,
    %cst_35 = arith.constant 0.000000e+00 : f32
    %83 = vector.broadcast %cst_35 : f32 to vector<8x128xf32>
    %84 = arith.select %77, %83, %75 : vector<8x128xi1>, vector<8x128xf32>
    %85 = vector.extract_strided_slice %8 {offsets = [32, 0], sizes = [8, 128], strides = [1, 1]} : vector<64x128xf32> to vector<8x128xf32>
    %cst_36 = arith.constant dense<0.000000e+00> : vector<8x128xf32>
    %86 = tpu.matmul %79, %11, %cst_36 {dimension_numbers = #tpu.dot_dimension_numbers<[1], [0], [0], [1], [0, 0, 1, 1], [], []>} : vector<8x128xf32>, vector<128x128xf32>, vector<8x128xf32> -> vector<8x128xf32>
    %87 = arith.addf %85, %86 : vector<8x128xf32>
    %88 = vector.broadcast %3 : f32 to vector<8x128xf32>
    %89 = arith.mulf %88, %72 : vector<8x128xf32>
    %90 = arith.addf %89, %87 : vector<8x128xf32>
    %91 = vector.broadcast %4 : f32 to vector<8x128xf32>
    %92 = arith.mulf %91, %84 : vector<8x128xf32>
    %93 = arith.addf %92, %90 : vector<8x128xf32>
    %cst_37 = arith.constant 1.000000e+00 : f32
    %94 = vector.broadcast %cst_37 : f32 to vector<8x128xf32>
    %95 = arith.cmpf oge, %93, %94 : vector<8x128xf32>
    %96 = arith.extui %95 : vector<8x128xi1> to vector<8x128xi32>
    %97 = arith.sitofp %96 : vector<8x128xi32> to vector<8x128xf32>
    %c4 = arith.constant 4 : index
    %c0_38 = arith.constant 0 : index
    %c0_39 = arith.constant 0 : index
    %98 = vector.load %arg6[%c4, %c0_38, %c0_39] : memref<8x8x128xf32, #tpu.memory_space<vmem>>, vector<1x8x128xf32>
    %99 = vector.shape_cast %98 : vector<1x8x128xf32> to vector<8x128xf32>
    %100 = vector.shape_cast %97 : vector<8x128xf32> to vector<1x8x128xf32>
    tpu.vector_store %arg6[%c4, %c0_38, %c0_39], %100 {strides = array<i32>} : memref<8x8x128xf32, #tpu.memory_space<vmem>>, vector<1x8x128xf32>,
    %cst_40 = arith.constant 0.000000e+00 : f32
    %101 = vector.broadcast %cst_40 : f32 to vector<8x128xf32>
    %102 = arith.select %95, %101, %93 : vector<8x128xi1>, vector<8x128xf32>
    %103 = vector.extract_strided_slice %8 {offsets = [40, 0], sizes = [8, 128], strides = [1, 1]} : vector<64x128xf32> to vector<8x128xf32>
    %cst_41 = arith.constant dense<0.000000e+00> : vector<8x128xf32>
    %104 = tpu.matmul %97, %11, %cst_41 {dimension_numbers = #tpu.dot_dimension_numbers<[1], [0], [0], [1], [0, 0, 1, 1], [], []>} : vector<8x128xf32>, vector<128x128xf32>, vector<8x128xf32> -> vector<8x128xf32>
    %105 = arith.addf %103, %104 : vector<8x128xf32>
    %106 = vector.broadcast %3 : f32 to vector<8x128xf32>
    %107 = arith.mulf %106, %90 : vector<8x128xf32>
    %108 = arith.addf %107, %105 : vector<8x128xf32>
    %109 = vector.broadcast %4 : f32 to vector<8x128xf32>
    %110 = arith.mulf %109, %102 : vector<8x128xf32>
    %111 = arith.addf %110, %108 : vector<8x128xf32>
    %cst_42 = arith.constant 1.000000e+00 : f32
    %112 = vector.broadcast %cst_42 : f32 to vector<8x128xf32>
    %113 = arith.cmpf oge, %111, %112 : vector<8x128xf32>
    %114 = arith.extui %113 : vector<8x128xi1> to vector<8x128xi32>
    %115 = arith.sitofp %114 : vector<8x128xi32> to vector<8x128xf32>
    %c5 = arith.constant 5 : index
    %c0_43 = arith.constant 0 : index
    %c0_44 = arith.constant 0 : index
    %116 = vector.load %arg6[%c5, %c0_43, %c0_44] : memref<8x8x128xf32, #tpu.memory_space<vmem>>, vector<1x8x128xf32>
    %117 = vector.shape_cast %116 : vector<1x8x128xf32> to vector<8x128xf32>
    %118 = vector.shape_cast %115 : vector<8x128xf32> to vector<1x8x128xf32>
    tpu.vector_store %arg6[%c5, %c0_43, %c0_44], %118 {strides = array<i32>} : memref<8x8x128xf32, #tpu.memory_space<vmem>>, vector<1x8x128xf32>,
    %cst_45 = arith.constant 0.000000e+00 : f32
    %119 = vector.broadcast %cst_45 : f32 to vector<8x128xf32>
    %120 = arith.select %113, %119, %111 : vector<8x128xi1>, vector<8x128xf32>
    %121 = vector.extract_strided_slice %8 {offsets = [48, 0], sizes = [8, 128], strides = [1, 1]} : vector<64x128xf32> to vector<8x128xf32>
    %cst_46 = arith.constant dense<0.000000e+00> : vector<8x128xf32>
    %122 = tpu.matmul %115, %11, %cst_46 {dimension_numbers = #tpu.dot_dimension_numbers<[1], [0], [0], [1], [0, 0, 1, 1], [], []>} : vector<8x128xf32>, vector<128x128xf32>, vector<8x128xf32> -> vector<8x128xf32>
    %123 = arith.addf %121, %122 : vector<8x128xf32>
    %124 = vector.broadcast %3 : f32 to vector<8x128xf32>
    %125 = arith.mulf %124, %108 : vector<8x128xf32>
    %126 = arith.addf %125, %123 : vector<8x128xf32>
    %127 = vector.broadcast %4 : f32 to vector<8x128xf32>
    %128 = arith.mulf %127, %120 : vector<8x128xf32>
    %129 = arith.addf %128, %126 : vector<8x128xf32>
    %cst_47 = arith.constant 1.000000e+00 : f32
    %130 = vector.broadcast %cst_47 : f32 to vector<8x128xf32>
    %131 = arith.cmpf oge, %129, %130 : vector<8x128xf32>
    %132 = arith.extui %131 : vector<8x128xi1> to vector<8x128xi32>
    %133 = arith.sitofp %132 : vector<8x128xi32> to vector<8x128xf32>
    %c6 = arith.constant 6 : index
    %c0_48 = arith.constant 0 : index
    %c0_49 = arith.constant 0 : index
    %134 = vector.load %arg6[%c6, %c0_48, %c0_49] : memref<8x8x128xf32, #tpu.memory_space<vmem>>, vector<1x8x128xf32>
    %135 = vector.shape_cast %134 : vector<1x8x128xf32> to vector<8x128xf32>
    %136 = vector.shape_cast %133 : vector<8x128xf32> to vector<1x8x128xf32>
    tpu.vector_store %arg6[%c6, %c0_48, %c0_49], %136 {strides = array<i32>} : memref<8x8x128xf32, #tpu.memory_space<vmem>>, vector<1x8x128xf32>,
    %cst_50 = arith.constant 0.000000e+00 : f32
    %137 = vector.broadcast %cst_50 : f32 to vector<8x128xf32>
    %138 = arith.select %131, %137, %129 : vector<8x128xi1>, vector<8x128xf32>
    %139 = vector.extract_strided_slice %8 {offsets = [56, 0], sizes = [8, 128], strides = [1, 1]} : vector<64x128xf32> to vector<8x128xf32>
    %cst_51 = arith.constant dense<0.000000e+00> : vector<8x128xf32>
    %140 = tpu.matmul %133, %11, %cst_51 {dimension_numbers = #tpu.dot_dimension_numbers<[1], [0], [0], [1], [0, 0, 1, 1], [], []>} : vector<8x128xf32>, vector<128x128xf32>, vector<8x128xf32> -> vector<8x128xf32>
    %141 = arith.addf %139, %140 : vector<8x128xf32>
    %142 = vector.broadcast %3 : f32 to vector<8x128xf32>
    %143 = arith.mulf %142, %126 : vector<8x128xf32>
    %144 = arith.addf %143, %141 : vector<8x128xf32>
    %145 = vector.broadcast %4 : f32 to vector<8x128xf32>
    %146 = arith.mulf %145, %138 : vector<8x128xf32>
    %147 = arith.addf %146, %144 : vector<8x128xf32>
    %cst_52 = arith.constant 1.000000e+00 : f32
    %148 = vector.broadcast %cst_52 : f32 to vector<8x128xf32>
    %149 = arith.cmpf oge, %147, %148 : vector<8x128xf32>
    %150 = arith.extui %149 : vector<8x128xi1> to vector<8x128xi32>
    %151 = arith.sitofp %150 : vector<8x128xi32> to vector<8x128xf32>
    %c7 = arith.constant 7 : index
    %c0_53 = arith.constant 0 : index
    %c0_54 = arith.constant 0 : index
    %152 = vector.load %arg6[%c7, %c0_53, %c0_54] : memref<8x8x128xf32, #tpu.memory_space<vmem>>, vector<1x8x128xf32>
    %153 = vector.shape_cast %152 : vector<1x8x128xf32> to vector<8x128xf32>
    %154 = vector.shape_cast %151 : vector<8x128xf32> to vector<1x8x128xf32>
    tpu.vector_store %arg6[%c7, %c0_53, %c0_54], %154 {strides = array<i32>} : memref<8x8x128xf32, #tpu.memory_space<vmem>>, vector<1x8x128xf32>,
    %cst_55 = arith.constant 0.000000e+00 : f32
    %155 = vector.broadcast %cst_55 : f32 to vector<8x128xf32>
    %156 = arith.select %149, %155, %147 : vector<8x128xi1>, vector<8x128xf32>
    %c0_56 = arith.constant 0 : index
    %c0_57 = arith.constant 0 : index
    %157 = vector.load %arg7[%c0_56, %c0_57] : memref<8x128xf32, #tpu.memory_space<vmem>>, vector<8x128xf32>
    tpu.vector_store %arg7[%c0_56, %c0_57], %144 {strides = array<i32>} : memref<8x128xf32, #tpu.memory_space<vmem>>, vector<8x128xf32>,
    %c0_58 = arith.constant 0 : index
    %c0_59 = arith.constant 0 : index
    %158 = vector.load %arg8[%c0_58, %c0_59] : memref<8x128xf32, #tpu.memory_space<vmem>>, vector<8x128xf32>
    tpu.vector_store %arg8[%c0_58, %c0_59], %156 {strides = array<i32>} : memref<8x128xf32, #tpu.memory_space<vmem>>, vector<8x128xf32>,
    %c0_60 = arith.constant 0 : index
    %c0_61 = arith.constant 0 : index
    %159 = vector.load %arg9[%c0_60, %c0_61] : memref<8x128xf32, #tpu.memory_space<vmem>>, vector<8x128xf32>
    tpu.vector_store %arg9[%c0_60, %c0_61], %151 {strides = array<i32>} : memref<8x128xf32, #tpu.memory_space<vmem>>, vector<8x128xf32>,
    return
  }
  func.func @transform_0(%arg0: i32, %arg1: i32) -> i32 {
    %c0_i32 = arith.constant 0 : i32
    %c0_i32_0 = arith.constant 0 : i32
    return %c0_i32 : i32
  }
  func.func @transform_1(%arg0: i32, %arg1: i32) -> (i32, i32, i32) {
    %c0_i32 = arith.constant 0 : i32
    %c0_i32_0 = arith.constant 0 : i32
    return %arg1, %arg0, %c0_i32 : i32, i32, i32
  }
  func.func @transform_2(%arg0: i32, %arg1: i32) -> (i32, i32) {
    %c0_i32 = arith.constant 0 : i32
    %c0_i32_0 = arith.constant 0 : i32
    %c0_i32_1 = arith.constant 0 : i32
    return %c0_i32, %c0_i32_0 : i32, i32
  }
  func.func @transform_3(%arg0: i32, %arg1: i32) -> (i32, i32) {
    %c0_i32 = arith.constant 0 : i32
    %c0_i32_0 = arith.constant 0 : i32
    %c0_i32_1 = arith.constant 0 : i32
    return %c0_i32, %c0_i32_0 : i32, i32
  }
  func.func @transform_4(%arg0: i32, %arg1: i32) -> (i32, i32, i32) {
    %c0_i32 = arith.constant 0 : i32
    %c0_i32_0 = arith.constant 0 : i32
    return %arg1, %arg0, %c0_i32 : i32, i32, i32
  }
  func.func @transform_5(%arg0: i32, %arg1: i32) -> (i32, i32) {
    %c0_i32 = arith.constant 0 : i32
    %c0_i32_0 = arith.constant 0 : i32
    return %arg0, %c0_i32 : i32, i32
  }
  func.func @transform_6(%arg0: i32, %arg1: i32) -> (i32, i32) {
    %c0_i32 = arith.constant 0 : i32
    %c0_i32_0 = arith.constant 0 : i32
    return %arg0, %c0_i32 : i32, i32
  }
}

</mosaic_0001>

<bundles_post_ra>
// kernel: tpu_custom_call.1
= control target key start
LH: loop header
LB: loop body
LE: loop exit
PB: predicated region body
PF: predicated region fallthrough
CT: control target
= control target key end

     0   :  { %12 = vsyncpa [#allocation6], 0  ;;  %s2133_s0 = inlined_call_operand.hbm [shape: f32[2], index: 0, kind: input, shape index: {}]   ;;  %s2134_s1 = inlined_call_operand.hbm [shape: f32[8,8,16], index: 1, kind: input, shape index: {}]   ;;  %s2135_s2 = inlined_call_operand.hbm [shape: f32[16,128], index: 2, kind: input, shape index: {}]   ;;  %s2136_s3 = inlined_call_operand.hbm [shape: f32[128,128], index: 3, kind: input, shape index: {}]   ;;  %s2137_s4 = inlined_call_operand.hbm [shape: f32[8,8,128], index: 4, kind: output, shape index: {0}]   ;;  %s2138_s5 = inlined_call_operand.hbm [shape: f32[8,128], index: 5, kind: output, shape index: {1}]   ;;  %s2139_s6 = inlined_call_operand.hbm [shape: f32[8,128], index: 6, kind: output, shape index: {2}]  }
   0x1   :  { %13 = vsyncpa [#allocation4], 0 }
   0x2   :  { %14 = vsyncpa [#allocation9], 0 }
   0x3   :  { %15 = vsyncpa [#allocation5], 0 }
   0x4   :  { %16 = vsyncpa [#allocation13], 0  ;;  %s1767_s21 = smov [#allocation8]   ;;  %s1768_s23 = smov [#allocation7]  }
   0x5   :  { %s42_s22 = sshll.u32 %s1767_s21, 4  ;;  %s30_s24 = sshll.u32 %s1768_s23, 4  ;;  %s43_s22 = int_to_ptr.vmem [resolvable:$true] %s42_s22  ;;  %s31_s24 = int_to_ptr.vmem [resolvable:$true] %s30_s24 }
   0x6   :  { %s1615_s27 = scalar_lea.hbm %s2135_s2, 256 }
   0x7   :  { %p1616_p0 = scmp.ne.s32.totalorder %s2135_s2, %s1615_s27  ;;  %p1619_p1 = scmp.lt.u32.totalorder %s1615_s27, %s2135_s2 }
   0x9   :  { %p1621_p2 = pnand %p1619_p1, %p1616_p0 }
   0xb   :  { %1624 = shalt.err (!%p1621_p2)
}
   0xc   :  { %s1625_s8 = scalar_lea.vmem %s43_s22, 256  ;;  %p1630_p4 = scmp.lt.s32.totalorder %s43_s22, %s43_s22 }
   0xd   :  { %p1626_p3 = scmp.ne.s32.totalorder %s43_s22, %s1625_s8  ;;  %p1631_p5 = scmp.lt.s32.totalorder %s1625_s8, %s1625_s8 }
   0xf   :  { %p1632_p6 = por %p1631_p5, %p1630_p4 }
  0x11   :  { %p1633_p7 = pnand %p1632_p6, %p1626_p3 }
  0x13   :  { %1636 = shalt.err (!%p1633_p7)
}
  0x14   :  { %s1769_s9 = smov 128   ;;  %s1770_s10 = smov 8  }
  0x15   :  { %48 = dma.hbm_to_vmem [thread:$0]  %s2135_s2, 256, %s43_s22, [#allocation9], %s1769_s9, %s1769_s9, %s1770_s10  }
  0x16   :  { %s1637_s15 = scalar_lea.hbm %s2133_s0, 16 }
  0x17   :  { %p1638_p8 = scmp.ne.s32.totalorder %s2133_s0, %s1637_s15  ;;  %p1641_p9 = scmp.lt.u32.totalorder %s1637_s15, %s2133_s0 }
  0x19   :  { %p1643_p10 = pnand %p1641_p9, %p1638_p8 }
  0x1b   :  { %1646 = shalt.err (!%p1643_p10)
}
  0x1c   :  { %s1771_s20 = smov [#allocation3]   ;;  %s1647_s25 = scalar_lea.hbm %s2134_s1, 1024 }
  0x1d   :  { %24 = dma.hbm_to_smem %s2133_s0, 16, %s1771_s20, [#allocation6]  }
  0x1e   :  { %p1648_p11 = scmp.ne.s32.totalorder %s2134_s1, %s1647_s25  ;;  %p1651_p12 = scmp.lt.u32.totalorder %s1647_s25, %s2134_s1 }
  0x20   :  { %p1653_p13 = pnand %p1651_p12, %p1648_p11 }
  0x22   :  { %1656 = shalt.err (!%p1653_p13)
}
  0x23   :  { %s1657_s30 = scalar_lea.vmem %s31_s24, 1024  ;;  %p1662_p1 = scmp.lt.s32.totalorder %s31_s24, %s31_s24 }
  0x24   :  { %p1658_p0 = scmp.ne.s32.totalorder %s31_s24, %s1657_s30  ;;  %p1663_p2 = scmp.lt.s32.totalorder %s1657_s30, %s1657_s30 }
  0x26   :  { %p1664_p3 = por %p1663_p2, %p1662_p1 }
  0x28   :  { %p1665_p4 = pnand %p1664_p3, %p1658_p0 }
  0x2a   :  { %1668 = shalt.err (!%p1665_p4)
}
  0x2b   :  { %36 = dma.hbm_to_vmem [thread:$0]  %s2134_s1, 1024, %s31_s24, [#allocation4], %s1769_s9, %s1769_s9, %s1770_s10  }
  0x2c   :  { %s1772_s8 = smov [#allocation10]   ;;  %s1669_s14 = scalar_lea.hbm %s2136_s3, 2048 }
  0x2d   :  { %s54_s11 = sshll.u32 %s1772_s8, 4  ;;  %p1670_p5 = scmp.ne.s32.totalorder %s2136_s3, %s1669_s14  ;;  %s55_s11 = int_to_ptr.vmem [resolvable:$true] %s54_s11 }
  0x2e   :  { %p1673_p6 = scmp.lt.u32.totalorder %s1669_s14, %s2136_s3 }
  0x30   :  { %p1675_p7 = pnand %p1673_p6, %p1670_p5 }
  0x32   :  { %1678 = shalt.err (!%p1675_p7)
}
  0x33   :  { %s1679_s19 = scalar_lea.vmem %s55_s11, 2048  ;;  %p1684_p9 = scmp.lt.s32.totalorder %s55_s11, %s55_s11 }
  0x34   :  { %p1680_p8 = scmp.ne.s32.totalorder %s55_s11, %s1679_s19  ;;  %p1685_p10 = scmp.lt.s32.totalorder %s1679_s19, %s1679_s19 }
  0x36   :  { %p1686_p11 = por %p1685_p10, %p1684_p9 }
  0x38   :  { %p1687_p12 = pnand %p1686_p11, %p1680_p8 }
  0x3a   :  { %1690 = shalt.err (!%p1687_p12)
}
  0x3b   :  { %60 = dma.hbm_to_vmem [thread:$0]  %s2136_s3, 2048, %s55_s11, [#allocation9], %s1769_s9, %s1769_s9, %s1770_s10  }
  0x3c   :  { %1757 = dma.done.wait [#allocation6], 16  }
  0x3d   :  { %1758 = vsyncadd [#allocation6], 4294967280 }
  0x3e   :  { %1759 = dma.done.wait [#allocation4], 1024  }
  0x3f   :  { %1760 = vsyncadd [#allocation4], 4294966272 }
  0x40   :  { %1761 = dma.done.wait [#allocation9], 2304  }
  0x41   :  { %1762 = vsyncadd [#allocation9], 4294964992 }
  0x42   :  { %73 = sfence }
  0x43   :  { %v225_v0 = vld [vmem:[#allocation10] sm:$0xff]  ;;  %v226_v1 = vld [vmem:[#allocation10 + $0x8] sm:$0xff]  ;;  %v227_v2 = vld [vmem:[#allocation10 + $0x10] sm:$0xff]  ;;  %v1773_v3 = vmov 0.0|0.0   ;;  %vm1774_vm0 = vmmov 0   ;;  %v1775_v6 = vmov 0.0  }
  0x44   :  { %1410 = vmatprep.subr.bf16.mxu1 %v1773_v3  ;;  %v1873_v4 = vpack.c.bf16 %v226_v1, %v225_v0  ;;  %v228_v5 = vld [vmem:[#allocation10 + $0x18] sm:$0xff]  ;;  %1158 = vmatprep.mubr.msk.f32.mxu1 %vm1774_vm0, %v1775_v6  ;;  %vm93_vm1 = vcmask 130048   ;;  %v229_v8 = vld [vmem:[#allocation10 + $0x20] sm:$0xff]  ;;  %v230_v9 = vld [vmem:[#allocation10 + $0x28] sm:$0xff]  ;;  %s81_s3 = sld [smem:[#allocation3]]  ;;  %s940_s20 = sld [smem:[#allocation3 + $0x1]] }
  0x45   :  { %v1878_v7 = vpack.c.bf16 %v228_v5, %v227_v2  ;;  %v83_v10 = vld [vmem:[#allocation8] sm:$0xff]  ;;  %v84_v11 = vld [vmem:[#allocation8 + $0x8] sm:$0xff]  ;;  %v1883_v14 = vpack.c.bf16 %v230_v9, %v229_v8  ;;  %v87_v18 = vld [vmem:[#allocation7 + $0x10] sm:$0xff]  ;;  %v1776_v52 = vmov 1.0   ;;  %s1777_s21 = smov [#allocation12]   ;;  %s1778_s2 = smov [#allocation11]  }
  0x46   :  { %1412 = vmatpush3.bf16.msra.mxu1 %v1873_v4  ;;  %v85_v12 = vld [vmem:[#allocation7] sm:$0xff]  ;;  %v1406_v13 = vpack.c.bf16 %v84_v11, %v83_v10  ;;  %v232_v16 = vld [vmem:[#allocation10 + $0x38] sm:$0xff]  ;;  %v233_v20 = vld [vmem:[#allocation10 + $0x40] sm:$0xff]  ;;  %s912_s23 = sshll.u32 %s1777_s21, 4  ;;  %s899_s22 = sshll.u32 %s1778_s2, 4  ;;  %s913_s23 = int_to_ptr.vmem [resolvable:$true] %s912_s23  ;;  %s900_s22 = int_to_ptr.vmem [resolvable:$true] %s899_s22 }
  0x47   :  { %1413 = vmatprep.subr.bf16.mxu1 %v1773_v3  ;;  %1114 = vmatprep.mubr.msk.f32.mxu0 %vm93_vm1, %v85_v12  ;;  %v231_v15 = vld [vmem:[#allocation10 + $0x30] sm:$0xff]  ;;  %v86_v17 = vld [vmem:[#allocation7 + $0x8] sm:$0xff]  ;;  %v234_v21 = vld [vmem:[#allocation10 + $0x48] sm:$0xff]  ;;  %s1779_s25 = smov [#allocation14]   ;;  %s1691_s27 = scalar_lea.vmem %s913_s23, 128 }
  0x48   :  { %1407 = vmatprep.subr.bf16.mxu0 %v1406_v13  ;;  %v1888_v19 = vpack.c.bf16 %v232_v16, %v231_v15  ;;  %v88_v22 = vld [vmem:[#allocation7 + $0x18] sm:$0xff]  ;;  %v1896_v23 = vpack.c.bf16 %v234_v21, %v233_v20  ;;  %v235_v24 = vld [vmem:[#allocation10 + $0x50] sm:$0xff]  ;;  %v236_v25 = vld [vmem:[#allocation10 + $0x58] sm:$0xff]  ;;  %s922_s26 = sshll.u32 %s1779_s25, 4  ;;  %p1692_p13 = scmp.ne.s32.totalorder %s913_s23, %s1691_s27  ;;  %s923_s26 = int_to_ptr.vmem [resolvable:$true] %s922_s26 }
  0x49   :  { %1409 = vmatpush3.bf16.msra.mxu0 %v1406_v13  ;;  %v1903_v26 = vpack.c.bf16 %v236_v25, %v235_v24  ;;  %v237_v27 = vld [vmem:[#allocation10 + $0x60] sm:$0xff]  ;;  %v238_v28 = vld [vmem:[#allocation10 + $0x68] sm:$0xff]  ;;  %v239_v30 = vld [vmem:[#allocation10 + $0x70] sm:$0xff]  ;;  %p1696_p0 = scmp.lt.s32.totalorder %s913_s23, %s913_s23  ;;  %p1697_p1 = scmp.lt.s32.totalorder %s1691_s27, %s1691_s27 }
  0x4a   :  { %1415 = vmatpush3.bf16.msra.mxu1 %v1878_v7  ;;  %1434 = vmatprep.subr.bf16.mxu0 %v1773_v3  ;;  %v1909_v29 = vpack.c.bf16 %v238_v28, %v237_v27  ;;  %v240_v31 = vld [vmem:[#allocation10 + $0x78] sm:$0xff]  ;;  %v89_v33 = vld [vmem:[#allocation7 + $0x20] sm:$0xff]  ;;  %v91_v35 = vld [vmem:[#allocation7 + $0x30] sm:$0xff]  ;;  %v1957_v41 = vstv %s81_s3  ;;  %v1959_v42 = vstv %s940_s20 }
  0x4b   :  { %1416 = vmatprep.subr.bf16.mxu1 %v1773_v3  ;;  %v1915_v32 = vpack.c.bf16 %v240_v31, %v239_v30  ;;  %v90_v34 = vld [vmem:[#allocation7 + $0x28] sm:$0xff]  ;;  %v92_v36 = vld [vmem:[#allocation7 + $0x38] sm:$0xff]  ;;  %v314_v43 = vmul.f32 0.0, %v1957_v41  ;;  %v317_v46 = vmul.f32 0.0, %v1959_v42  ;;  %p1698_p2 = por %p1697_p1, %p1696_p0 }
  0x4c   :  { %1115 = vmatmul.mubr.msk.f32.vlgmr.msra.gmra.mrb[0].mxu0 %vm93_vm1, %v86_v17 }
  0x4d   :  { %1436 = vmatpush3.bf16.msra.mxu0 %v1873_v4  ;;  %1117 = vmatprep.mubr.msk.f32.mxu0 %vm93_vm1, %v87_v18  ;;  %p1699_p3 = pnand %p1698_p2, %p1692_p13 }
  0x4e   :  { %1418 = vmatpush3.bf16.msra.mxu1 %v1883_v14  ;;  %1437 = vmatprep.subr.bf16.mxu0 %v1773_v3 }
  0x4f   :  { %1419 = vmatprep.subr.bf16.mxu1 %v1773_v3 }
  0x50   :  { %1118 = vmatmul.mubr.msk.f32.gmra.mrb[2].mxu0 %vm93_vm1, %v88_v22 }
  0x51   :  { %1439 = vmatpush3.bf16.msra.mxu0 %v1878_v7  ;;  %1120 = vmatprep.mubr.msk.f32.mxu0 %vm93_vm1, %v89_v33 }
  0x52   :  { %1421 = vmatpush3.bf16.msra.mxu1 %v1888_v19  ;;  %1440 = vmatprep.subr.bf16.mxu0 %v1773_v3 }
  0x53   :  { %1422 = vmatprep.subr.bf16.mxu1 %v1773_v3 }
  0x54   :  { %1121 = vmatmul.mubr.msk.f32.gmra.mrb[4].mxu0 %vm93_vm1, %v90_v34 }
  0x55   :  { %1442 = vmatpush3.bf16.msra.mxu0 %v1883_v14  ;;  %1123 = vmatprep.mubr.msk.f32.mxu0 %vm93_vm1, %v91_v35 }
  0x56   :  { %1424 = vmatpush3.bf16.msra.mxu1 %v1896_v23  ;;  %1443 = vmatprep.subr.bf16.mxu0 %v1773_v3 }
  0x57   :  { %1425 = vmatprep.subr.bf16.mxu1 %v1773_v3 }
  0x58   :  { %1124 = vmatmul.mubr.msk.f32.gmra.mrb[6].mxu0 %vm93_vm1, %v92_v36 }
  0x59   :  { %1445 = vmatpush3.bf16.msra.mxu0 %v1888_v19  ;;  %1193 = vmatprep.mubr.msk.f32.mxu0 %vm1774_vm0, %v1775_v6 }
  0x5a   :  { %1427 = vmatpush3.bf16.msra.mxu1 %v1903_v26  ;;  %1446 = vmatprep.subr.bf16.mxu0 %v1773_v3 }
  0x5b   :  { %1428 = vmatprep.subr.bf16.mxu1 %v1773_v3 }
  0x5d   :  { %1448 = vmatpush3.bf16.msra.mxu0 %v1896_v23 }
  0x5e   :  { %1430 = vmatpush3.bf16.msra.mxu1 %v1909_v29  ;;  %1449 = vmatprep.subr.bf16.mxu0 %v1773_v3 }
  0x5f   :  { %1431 = vmatprep.subr.bf16.mxu1 %v1773_v3 }
  0x61   :  { %1451 = vmatpush3.bf16.msra.mxu0 %v1903_v26 }
  0x62   :  { %1433 = vmatpush3.bf16.msra.mxu1 %v1915_v32  ;;  %1452 = vmatprep.subr.bf16.mxu0 %v1773_v3 }
  0x63   :  { %1458 = vmatprep.subr.bf16.mxu1 %v1773_v3 }
  0x65   :  { %1159 = vmatmul.mubr.f32.vlgmr.msra.gmra.mrb[0].mxu1 %v1775_v6  ;;  %1454 = vmatpush3.bf16.msra.mxu0 %v1909_v29 }
  0x66   :  { %1460 = vmatpush3.bf16.msra.mxu1 %v1873_v4  ;;  %1228 = vmatprep.mubr.msk.f32.mxu1 %vm1774_vm0, %v1775_v6 }
  0x67   :  { %1461 = vmatprep.subr.bf16.mxu1 %v1773_v3  ;;  %1455 = vmatprep.subr.bf16.mxu0 %v1773_v3 }
  0x69   :  { %1457 = vmatpush3.bf16.msra.mxu0 %v1915_v32 }
  0x6a   :  { %1463 = vmatpush3.bf16.msra.mxu1 %v1878_v7  ;;  %1482 = vmatprep.subr.bf16.mxu0 %v1773_v3 }
  0x6b   :  { %1464 = vmatprep.subr.bf16.mxu1 %v1773_v3 }
  0x6e   :  { %1466 = vmatpush3.bf16.msra.mxu1 %v1883_v14 }
  0x6f   :  { %1467 = vmatprep.subr.bf16.mxu1 %v1773_v3 }
  0x72   :  { %1469 = vmatpush3.bf16.msra.mxu1 %v1888_v19 }
  0x73   :  { %1470 = vmatprep.subr.bf16.mxu1 %v1773_v3 }
  0x76   :  { %1472 = vmatpush3.bf16.msra.mxu1 %v1896_v23 }
  0x77   :  { %1473 = vmatprep.subr.bf16.mxu1 %v1773_v3 }
  0x7a   :  { %1475 = vmatpush3.bf16.msra.mxu1 %v1903_v26 }
  0x7b   :  { %1476 = vmatprep.subr.bf16.mxu1 %v1773_v3 }
  0x7e   :  { %1478 = vmatpush3.bf16.msra.mxu1 %v1909_v29 }
  0x7f   :  { %1479 = vmatprep.subr.bf16.mxu1 %v1773_v3 }
  0x82   :  { %1481 = vmatpush3.bf16.msra.mxu1 %v1915_v32 }
  0x83   :  { %1506 = vmatprep.subr.bf16.mxu1 %v1773_v3 }
 0x11f   :  { %v1116_v37 = vpop.f32.mrb[0].mxu0 }
 0x120   :  { %v184_v38 = vpop.f32.mrb[1].mxu0 }
 0x123   :  { %v1953_v39 = vpop.f32.mrb[2].mxu0 }
 0x124   :  { %v1955_v40 = vpop.f32.mrb[3].mxu0 }
 0x127   :  { %v1983_v53 = vpop.f32.mrb[4].mxu0 }
 0x128   :  { %v1985_v54 = vpop.f32.mrb[5].mxu0 }
 0x12b   :  { %v1987_v55 = vpop.f32.mrb[6].mxu0 }
 0x12c   :  { %v1989_v56 = vpop.f32.mrb[7].mxu0 }
 0x138   :  { %v308_v44 = vpop.f32.mrb[0].mxu1 }
 0x139   :  { %v312_v45 = vadd.f32 %v308_v44, %v184_v38  ;;  %v1160_v47 = vpop.f32.mrb[1].mxu1 }
 0x13b   :  { %v315_v48 = vadd.f32 %v314_v43, %v312_v45 }
 0x13d   :  { %v318_v49 = vadd.f32 %v317_v46, %v315_v48  ;;  %v395_v59 = vmul.f32 %v315_v48, %v1957_v41 }
 0x13f   :  { %vm319_vm2 = vcmp.ge.f32.partialorder %v318_v49, 1.0 }
 0x140   :  { %v949_v50 = vsel %vm319_vm2, 1.0, %v1775_v6  ;;  %v323_v51 = vsel %vm319_vm2, 0.0, %v318_v49  ;;  %1194 = vmatmul.mubr.msk.f32.vlgmr.msra.gmra.mrb[8].mxu0 %vm319_vm2, %v1776_v52 }
 0x141   :  { %322 = vst [vmem:[#allocation11] sm:$0xff] %v949_v50  ;;  %1484 = vmatpush3.bf16.msra.mxu0 %v1873_v4  ;;  %1263 = vmatprep.mubr.msk.f32.mxu0 %vm1774_vm0, %v1775_v6  ;;  %v397_v62 = vmul.f32 %v323_v51, %v1959_v42 }
 0x142   :  { %1485 = vmatprep.subr.bf16.mxu0 %v1773_v3 }
 0x145   :  { %1487 = vmatpush3.bf16.msra.mxu0 %v1878_v7 }
 0x146   :  { %1488 = vmatprep.subr.bf16.mxu0 %v1773_v3 }
 0x149   :  { %1490 = vmatpush3.bf16.msra.mxu0 %v1883_v14 }
 0x14a   :  { %1491 = vmatprep.subr.bf16.mxu0 %v1773_v3 }
 0x14d   :  { %1493 = vmatpush3.bf16.msra.mxu0 %v1888_v19 }
 0x14e   :  { %1494 = vmatprep.subr.bf16.mxu0 %v1773_v3 }
 0x151   :  { %1496 = vmatpush3.bf16.msra.mxu0 %v1896_v23 }
 0x152   :  { %1497 = vmatprep.subr.bf16.mxu0 %v1773_v3 }
 0x155   :  { %1499 = vmatpush3.bf16.msra.mxu0 %v1903_v26 }
 0x156   :  { %1500 = vmatprep.subr.bf16.mxu0 %v1773_v3 }
 0x159   :  { %1502 = vmatpush3.bf16.msra.mxu0 %v1909_v29 }
 0x15a   :  { %1503 = vmatprep.subr.bf16.mxu0 %v1773_v3 }
 0x15d   :  { %1505 = vmatpush3.bf16.msra.mxu0 %v1915_v32 }
 0x15e   :  { %1530 = vmatprep.subr.bf16.mxu0 %v1773_v3 }
 0x213   :  { %v390_v57 = vpop.f32.mrb[8].mxu0 }
 0x214   :  { %v394_v58 = vadd.f32 %v1116_v37, %v390_v57  ;;  %v1195_v60 = vpop.f32.mrb[9].mxu0 }
 0x216   :  { %v396_v61 = vadd.f32 %v395_v59, %v394_v58 }
 0x218   :  { %v398_v63 = vadd.f32 %v397_v62, %v396_v61  ;;  %v476_v8 = vmul.f32 %v396_v61, %v1957_v41 }
 0x21a   :  { %vm399_vm3 = vcmp.ge.f32.partialorder %v398_v63, 1.0 }
 0x21b   :  { %v951_v0 = vsel %vm399_vm3, 1.0, %v1775_v6  ;;  %1229 = vmatmul.mubr.msk.f32.vlgmr.msra.gmra.mrb[2].mxu1 %vm399_vm3, %v1776_v52  ;;  %v404_v1 = vsel %vm399_vm3, 0.0, %v398_v63 }
 0x21c   :  { %403 = vst [vmem:[#allocation11 + $0x8] sm:$0xff] %v951_v0  ;;  %1508 = vmatpush3.bf16.msra.mxu1 %v1873_v4  ;;  %1298 = vmatprep.mubr.msk.f32.mxu1 %vm1774_vm0, %v1775_v6  ;;  %v478_v11 = vmul.f32 %v404_v1, %v1959_v42 }
 0x21d   :  { %1509 = vmatprep.subr.bf16.mxu1 %v1773_v3 }
 0x220   :  { %1511 = vmatpush3.bf16.msra.mxu1 %v1878_v7 }
 0x221   :  { %1512 = vmatprep.subr.bf16.mxu1 %v1773_v3 }
 0x224   :  { %1514 = vmatpush3.bf16.msra.mxu1 %v1883_v14 }
 0x225   :  { %1515 = vmatprep.subr.bf16.mxu1 %v1773_v3 }
 0x228   :  { %1517 = vmatpush3.bf16.msra.mxu1 %v1888_v19 }
 0x229   :  { %1518 = vmatprep.subr.bf16.mxu1 %v1773_v3 }
 0x22c   :  { %1520 = vmatpush3.bf16.msra.mxu1 %v1896_v23 }
 0x22d   :  { %1521 = vmatprep.subr.bf16.mxu1 %v1773_v3 }
 0x230   :  { %1523 = vmatpush3.bf16.msra.mxu1 %v1903_v26 }
 0x231   :  { %1524 = vmatprep.subr.bf16.mxu1 %v1773_v3 }
 0x234   :  { %1526 = vmatpush3.bf16.msra.mxu1 %v1909_v29 }
 0x235   :  { %1527 = vmatprep.subr.bf16.mxu1 %v1773_v3 }
 0x238   :  { %1529 = vmatpush3.bf16.msra.mxu1 %v1915_v32 }
 0x239   :  { %1554 = vmatprep.subr.bf16.mxu1 %v1773_v3 }
 0x2ee   :  { %v471_v2 = vpop.f32.mrb[2].mxu1 }
 0x2ef   :  { %v475_v5 = vadd.f32 %v471_v2, %v1955_v40  ;;  %v1230_v9 = vpop.f32.mrb[3].mxu1 }
 0x2f1   :  { %v477_v10 = vadd.f32 %v476_v8, %v475_v5 }
 0x2f3   :  { %v479_v12 = vadd.f32 %v478_v11, %v477_v10  ;;  %v557_v18 = vmul.f32 %v477_v10, %v1957_v41 }
 0x2f5   :  { %vm480_vm4 = vcmp.ge.f32.partialorder %v479_v12, 1.0 }
 0x2f6   :  { %v953_v13 = vsel %vm480_vm4, 1.0, %v1775_v6  ;;  %1264 = vmatmul.mubr.msk.f32.vlgmr.msra.gmra.mrb[10].mxu0 %vm480_vm4, %v1776_v52  ;;  %v485_v15 = vsel %vm480_vm4, 0.0, %v479_v12 }
 0x2f7   :  { %484 = vst [vmem:[#allocation11 + $0x10] sm:$0xff] %v953_v13  ;;  %1532 = vmatpush3.bf16.msra.mxu0 %v1873_v4  ;;  %1333 = vmatprep.mubr.msk.f32.mxu0 %vm1774_vm0, %v1775_v6  ;;  %v559_v22 = vmul.f32 %v485_v15, %v1959_v42 }
 0x2f8   :  { %1533 = vmatprep.subr.bf16.mxu0 %v1773_v3 }
 0x2fb   :  { %1535 = vmatpush3.bf16.msra.mxu0 %v1878_v7 }
 0x2fc   :  { %1536 = vmatprep.subr.bf16.mxu0 %v1773_v3 }
 0x2ff   :  { %1538 = vmatpush3.bf16.msra.mxu0 %v1883_v14 }
 0x300   :  { %1539 = vmatprep.subr.bf16.mxu0 %v1773_v3 }
 0x303   :  { %1541 = vmatpush3.bf16.msra.mxu0 %v1888_v19 }
 0x304   :  { %1542 = vmatprep.subr.bf16.mxu0 %v1773_v3 }
 0x307   :  { %1544 = vmatpush3.bf16.msra.mxu0 %v1896_v23 }
 0x308   :  { %1545 = vmatprep.subr.bf16.mxu0 %v1773_v3 }
 0x30b   :  { %1547 = vmatpush3.bf16.msra.mxu0 %v1903_v26 }
 0x30c   :  { %1548 = vmatprep.subr.bf16.mxu0 %v1773_v3 }
 0x30f   :  { %1550 = vmatpush3.bf16.msra.mxu0 %v1909_v29 }
 0x310   :  { %1551 = vmatprep.subr.bf16.mxu0 %v1773_v3 }
 0x313   :  { %1553 = vmatpush3.bf16.msra.mxu0 %v1915_v32 }
 0x314   :  { %1578 = vmatprep.subr.bf16.mxu0 %v1773_v3 }
 0x3c9   :  { %v552_v16 = vpop.f32.mrb[10].mxu0 }
 0x3ca   :  { %v556_v17 = vadd.f32 %v1953_v39, %v552_v16  ;;  %v1265_v20 = vpop.f32.mrb[11].mxu0 }
 0x3cc   :  { %v558_v21 = vadd.f32 %v557_v18, %v556_v17 }
 0x3ce   :  { %v560_v24 = vadd.f32 %v559_v22, %v558_v21  ;;  %v638_v31 = vmul.f32 %v558_v21, %v1957_v41 }
 0x3d0   :  { %vm561_vm5 = vcmp.ge.f32.partialorder %v560_v24, 1.0 }
 0x3d1   :  { %v955_v25 = vsel %vm561_vm5, 1.0, %v1775_v6  ;;  %1299 = vmatmul.mubr.msk.f32.vlgmr.msra.gmra.mrb[4].mxu1 %vm561_vm5, %v1776_v52  ;;  %v566_v27 = vsel %vm561_vm5, 0.0, %v560_v24 }
 0x3d2   :  { %565 = vst [vmem:[#allocation11 + $0x18] sm:$0xff] %v955_v25  ;;  %1556 = vmatpush3.bf16.msra.mxu1 %v1873_v4  ;;  %1368 = vmatprep.mubr.msk.f32.mxu1 %vm1774_vm0, %v1775_v6  ;;  %v640_v35 = vmul.f32 %v566_v27, %v1959_v42 }
 0x3d3   :  { %1557 = vmatprep.subr.bf16.mxu1 %v1773_v3 }
 0x3d6   :  { %1559 = vmatpush3.bf16.msra.mxu1 %v1878_v7 }
 0x3d7   :  { %1560 = vmatprep.subr.bf16.mxu1 %v1773_v3 }
 0x3da   :  { %1562 = vmatpush3.bf16.msra.mxu1 %v1883_v14 }
 0x3db   :  { %1563 = vmatprep.subr.bf16.mxu1 %v1773_v3 }
 0x3de   :  { %1565 = vmatpush3.bf16.msra.mxu1 %v1888_v19 }
 0x3df   :  { %1566 = vmatprep.subr.bf16.mxu1 %v1773_v3 }
 0x3e2   :  { %1568 = vmatpush3.bf16.msra.mxu1 %v1896_v23 }
 0x3e3   :  { %1569 = vmatprep.subr.bf16.mxu1 %v1773_v3 }
 0x3e6   :  { %1571 = vmatpush3.bf16.msra.mxu1 %v1903_v26 }
 0x3e7   :  { %1572 = vmatprep.subr.bf16.mxu1 %v1773_v3 }
 0x3ea   :  { %1574 = vmatpush3.bf16.msra.mxu1 %v1909_v29 }
 0x3eb   :  { %1575 = vmatprep.subr.bf16.mxu1 %v1773_v3 }
 0x3ee   :  { %1577 = vmatpush3.bf16.msra.mxu1 %v1915_v32 }
 0x4a4   :  { %v633_v28 = vpop.f32.mrb[4].mxu1 }
 0x4a5   :  { %v637_v30 = vadd.f32 %v633_v28, %v1985_v54  ;;  %v1300_v33 = vpop.f32.mrb[5].mxu1 }
 0x4a7   :  { %v639_v34 = vadd.f32 %v638_v31, %v637_v30 }
 0x4a9   :  { %v641_v36 = vadd.f32 %v640_v35, %v639_v34 }
 0x4ab   :  { %vm642_vm6 = vcmp.ge.f32.partialorder %v641_v36, 1.0 }
 0x4ac   :  { %v957_v37 = vsel %vm642_vm6, 1.0, %v1775_v6  ;;  %1334 = vmatmul.mubr.msk.f32.vlgmr.msra.gmra.mrb[12].mxu0 %vm642_vm6, %v1776_v52  ;;  %v647_v38 = vsel %vm642_vm6, 0.0, %v641_v36 }
 0x4ad   :  { %646 = vst [vmem:[#allocation11 + $0x20] sm:$0xff] %v957_v37  ;;  %1580 = vmatpush3.bf16.msra.mxu0 %v1873_v4  ;;  %1403 = vmatprep.mubr.msk.f32.mxu0 %vm1774_vm0, %v1775_v6 }
 0x4ae   :  { %1581 = vmatprep.subr.bf16.mxu0 %v1773_v3 }
 0x4b1   :  { %1583 = vmatpush3.bf16.msra.mxu0 %v1878_v7 }
 0x4b2   :  { %1584 = vmatprep.subr.bf16.mxu0 %v1773_v3 }
 0x4b5   :  { %1586 = vmatpush3.bf16.msra.mxu0 %v1883_v14  ;;  %v719_v14 = vmul.f32 %v639_v34, %v1957_v41 }
 0x4b6   :  { %1587 = vmatprep.subr.bf16.mxu0 %v1773_v3 }
 0x4b9   :  { %1589 = vmatpush3.bf16.msra.mxu0 %v1888_v19 }
 0x4ba   :  { %1590 = vmatprep.subr.bf16.mxu0 %v1773_v3 }
 0x4bd   :  { %1592 = vmatpush3.bf16.msra.mxu0 %v1896_v23  ;;  %v721_v23 = vmul.f32 %v647_v38, %v1959_v42 }
 0x4be   :  { %1593 = vmatprep.subr.bf16.mxu0 %v1773_v3 }
 0x4c1   :  { %1595 = vmatpush3.bf16.msra.mxu0 %v1903_v26 }
 0x4c2   :  { %1596 = vmatprep.subr.bf16.mxu0 %v1773_v3 }
 0x4c5   :  { %1598 = vmatpush3.bf16.msra.mxu0 %v1909_v29 }
 0x4c6   :  { %1599 = vmatprep.subr.bf16.mxu0 %v1773_v3 }
 0x4c9   :  { %1601 = vmatpush3.bf16.msra.mxu0 %v1915_v32 }
 0x57f   :  { %v714_v4 = vpop.f32.mrb[12].mxu0 }
 0x580   :  { %v718_v7 = vadd.f32 %v1983_v53, %v714_v4  ;;  %v1335_v19 = vpop.f32.mrb[13].mxu0 }
 0x582   :  { %v720_v39 = vadd.f32 %v719_v14, %v718_v7 }
 0x584   :  { %v722_v40 = vadd.f32 %v721_v23, %v720_v39  ;;  %v800_v43 = vmul.f32 %v720_v39, %v1957_v41 }
 0x586   :  { %vm723_vm7 = vcmp.ge.f32.partialorder %v722_v40, 1.0 }
 0x587   :  { %v959_v26 = vsel %vm723_vm7, 1.0, %v1775_v6  ;;  %1369 = vmatmul.mubr.msk.f32.vlgmr.msra.gmra.mrb[6].mxu1 %vm723_vm7, %v1776_v52  ;;  %v728_v29 = vsel %vm723_vm7, 0.0, %v722_v40 }
 0x588   :  { %727 = vst [vmem:[#allocation11 + $0x28] sm:$0xff] %v959_v26  ;;  %v802_v46 = vmul.f32 %v728_v29, %v1959_v42 }
 0x65a   :  { %v795_v3 = vpop.f32.mrb[6].mxu1 }
 0x65b   :  { %v799_v32 = vadd.f32 %v795_v3, %v1989_v56  ;;  %v1370_v44 = vpop.f32.mrb[7].mxu1 }
 0x65d   :  { %v801_v45 = vadd.f32 %v800_v43, %v799_v32 }
 0x65f   :  { %v803_v47 = vadd.f32 %v802_v46, %v801_v45  ;;  %v881_v53 = vmul.f32 %v801_v45, %v1957_v41 }
 0x661   :  { %vm804_vm8 = vcmp.ge.f32.partialorder %v803_v47, 1.0 }
 0x662   :  { %v961_v48 = vsel %vm804_vm8, 1.0, %v1775_v6  ;;  %1404 = vmatmul.mubr.msk.f32.vlgmr.msra.gmra.mrb[14].mxu0 %vm804_vm8, %v1776_v52  ;;  %v809_v49 = vsel %vm804_vm8, 0.0, %v803_v47 }
 0x663   :  { %808 = vst [vmem:[#allocation11 + $0x30] sm:$0xff] %v961_v48  ;;  %v883_v57 = vmul.f32 %v809_v49, %v1959_v42 }
 0x735   :  { %v876_v50 = vpop.f32.mrb[14].mxu0 }
 0x736   :  { %v880_v51 = vadd.f32 %v1987_v55, %v876_v50  ;;  %v1405_v54 = vpop.f32.mrb[15].mxu0 }
 0x738   :  { %v882_v56 = vadd.f32 %v881_v53, %v880_v51 }
 0x73a   :  { %v884_v58 = vadd.f32 %v883_v57, %v882_v56  ;;  %891 = vst [vmem:[#allocation12] sm:$0xff] %v882_v56 }
 0x73b   :  { %1702 = shalt.err (!%p1699_p3)
}
 0x73c   :  { %s1703_s30 = scalar_lea.hbm %s2138_s5, 128 }
 0x73d   :  { %p1704_p4 = scmp.ne.s32.totalorder %s2138_s5, %s1703_s30  ;;  %p1707_p5 = scmp.lt.u32.totalorder %s1703_s30, %s2138_s5 }
 0x73f   :  { %p1709_p6 = pnand %p1707_p5, %p1704_p4 }
 0x741   :  { %1712 = shalt.err (!%p1709_p6)
}
 0x742   :  { %915 = dma.vmem_to_hbm [thread:$0]  %s913_s23, 128, %s2138_s5, [#allocation13]   ;;  %vm885_vm9 = vcmp.ge.f32.partialorder %v884_v58, 1.0 }
 0x743   :  { %v963_v41 = vsel %vm885_vm9, 1.0, %v1775_v6  ;;  %v890_v42 = vsel %vm885_vm9, 0.0, %v884_v58  ;;  %s1713_s14 = scalar_lea.vmem %s900_s22, 1024  ;;  %p1718_p8 = scmp.lt.s32.totalorder %s900_s22, %s900_s22 }
 0x744   :  { %889 = vst [vmem:[#allocation11 + $0x38] sm:$0xff] %v963_v41  ;;  %892 = vst [vmem:[#allocation14] sm:$0xff] %v890_v42  ;;  %p1714_p7 = scmp.ne.s32.totalorder %s900_s22, %s1713_s14  ;;  %p1719_p9 = scmp.lt.s32.totalorder %s1713_s14, %s1713_s14 }
 0x746   :  { %p1720_p10 = por %p1719_p9, %p1718_p8 }
 0x748   :  { %p1721_p11 = pnand %p1720_p10, %p1714_p7 }
 0x74a   :  { %1724 = shalt.err (!%p1721_p11)
}
 0x74b   :  { %s1725_s17 = scalar_lea.hbm %s2137_s4, 1024 }
 0x74c   :  { %p1726_p12 = scmp.ne.s32.totalorder %s2137_s4, %s1725_s17  ;;  %p1729_p13 = scmp.lt.u32.totalorder %s1725_s17, %s2137_s4 }
 0x74e   :  { %p1731_p0 = pnand %p1729_p13, %p1726_p12 }
 0x750   :  { %1734 = shalt.err (!%p1731_p0)
}
 0x751   :  { %905 = dma.vmem_to_hbm [thread:$0]  %s900_s22, 1024, %s2137_s4, [#allocation5], %s1769_s9, %s1769_s9, %s1770_s10  }
 0x752   :  { %s1735_s20 = scalar_lea.vmem %s923_s26, 128  ;;  %p1740_p2 = scmp.lt.s32.totalorder %s923_s26, %s923_s26 }
 0x753   :  { %p1736_p1 = scmp.ne.s32.totalorder %s923_s26, %s1735_s20  ;;  %p1741_p3 = scmp.lt.s32.totalorder %s1735_s20, %s1735_s20 }
 0x755   :  { %p1742_p4 = por %p1741_p3, %p1740_p2 }
 0x757   :  { %p1743_p5 = pnand %p1742_p4, %p1736_p1 }
 0x759   :  { %1746 = shalt.err (!%p1743_p5)
}
 0x75a   :  { %s1747_s2 = scalar_lea.hbm %s2139_s6, 128 }
 0x75b   :  { %p1748_p6 = scmp.ne.s32.totalorder %s2139_s6, %s1747_s2  ;;  %p1751_p7 = scmp.lt.u32.totalorder %s1747_s2, %s2139_s6 }
 0x75d   :  { %p1753_p8 = pnand %p1751_p7, %p1748_p6 }
 0x75f   :  { %1756 = shalt.err (!%p1753_p8)
}
 0x760   :  { %925 = dma.vmem_to_hbm [thread:$0]  %s923_s26, 128, %s2139_s6, [#allocation13]  }
 0x761   :  { %1763 = dma.done.wait [#allocation5], 1024  }
 0x762   :  { %1764 = vsyncadd [#allocation5], 4294966272 }
 0x763   :  { %1765 = dma.done.wait [#allocation13], 256  }
 0x764   :  { %1766 = vsyncadd [#allocation13], 4294967040 }
 0x765   :  { %935 = vsyncpa [#allocation4], 1 }
 0x766   :  { %936 = vsyncpa [#allocation9], 1 }
 0x767   :  { %937 = vsyncpa [#allocation5], 1 }
 0x768   :  { %938 = vsyncpa [#allocation13], 1 }
 0x769   :  { %939 = vsyncpa [#allocation6], 1 }

</bundles_post_ra>
